<compile_context>
chip_gen: v6e
topology: v6e:2x2x1
jax: 0.10.0
libtpu: 0.0.40
codegen_flags: <defaults>
</compile_context>

<pallas_src>
import functools

import jax
import jax.numpy as jnp
from jax.experimental import pallas as pl
from jax.experimental.pallas import tpu as pltpu

SELU_ALPHA = 1.6732632423543772
SELU_SCALE = 1.0507009873554805

FEATURE_DIMS = [(103, 64), (64, 32), (32, 32), (32, 32)]   # cli feature extractor
NUM_LAYERS = len(FEATURE_DIMS)
F_IN = FEATURE_DIMS[0][0]     # 103 raw clinical features
PAD = 128                     # every hidden dim zero-padded to one 128-lane tile

_ROW_BC = NUM_LAYERS          # bias-slab row 4: classifier bias (broadcast)
_BIAS_ROWS = 8                # pad bias slab to a full (8, 128) tile


def _selu(x):
    return SELU_SCALE * jnp.where(x > 0, x, SELU_ALPHA * (jnp.exp(x) - 1.0))


def _choose_tile_n(n):
    """Rows per grid step: >=2 grid points (v7x has 2 TCs), 128..1024 rows/tile."""
    if n < PAD:
        return int(n)                     # one tile whose block dims == array dims
    half = -(-n // 2)                     # ceil(n / 2)
    t = -(-half // PAD) * PAD             # round up to a multiple of 128
    return int(max(PAD, min(1024, t)))


def mil_cli_kernel(x_ref, w0_ref, wr_ref, b_ref, wc_ref,
                   y_ref, psum_ref, xpad_ref, *, n_valid, tile_n):
    """One TILE_N-row chunk: 4x[Linear+ReLU] -> Linear(32,1)+SELU -> partial mean."""
    pid = pl.program_id(0)

    # Zero-extend the 103 clinical features to a full 128-lane tile in VMEM so no
    # lane-padded copy of x ever touches HBM.
    xpad_ref[:, F_IN:] = jnp.zeros((tile_n, PAD - F_IN), jnp.float32)
    xpad_ref[:, :F_IN] = x_ref[...]
    h = xpad_ref[...]                                        # (tile_n, 128) f32

    # Layer 0 in f32 (raw features), layers 1..3 feed the MXU bf16 operands with
    # f32 accumulation; bias add / ReLU stay f32 on the VPU.
    h = jnp.dot(h, w0_ref[...], preferred_element_type=jnp.float32) + b_ref[0:1, :]
    h = jnp.maximum(h, 0.0)
    for l in range(NUM_LAYERS - 1):                          # unrolled at trace time
        h = jnp.dot(h.astype(jnp.bfloat16), wr_ref[l],
                    preferred_element_type=jnp.float32) + b_ref[l + 1:l + 2, :]
        h = jnp.maximum(h, 0.0)

    # Classifier Linear(32,1)+SELU produced lane-dense: transpose H once (XLU),
    # lane-broadcast the classifier column, reduce over sublanes, then SELU on a
    # single (1, tile_n) lane-dense row and an unmasked lane-dense store.
    ht = jnp.transpose(h)                                    # (128, tile_n)
    z = jnp.sum(ht * wc_ref[...], axis=0, keepdims=True)     # (1, tile_n)
    z = z + b_ref[_ROW_BC:_ROW_BC + 1, 0:1]
    y = _selu(z)
    y_ref[...] = y.reshape(1, 1, tile_n)

    # Fused mean pooling: per-tile partial sum over valid rows only.  Rows past n
    # come from a partial edge DMA (undefined data) -> masked out with where.
    lane = jax.lax.broadcasted_iota(jnp.int32, (1, tile_n), 1)
    valid = (pid * tile_n + lane) < n_valid
    psum_ref[...] = jnp.sum(jnp.where(valid, y, 0.0),
                            axis=-1, keepdims=True).reshape(1, 1, 1)


def init_params(key):
    """Deterministic synthetic parameters with PyTorch-like shapes."""
    feats = []
    for (din, dout) in FEATURE_DIMS:
        key, kw, kb = jax.random.split(key, 3)
        w = jax.random.normal(kw, (din, dout), jnp.float32) / jnp.sqrt(din)
        b = jax.random.normal(kb, (dout,), jnp.float32) * 0.05
        feats.append((w, b))
    key, kw, kb = jax.random.split(key, 3)
    wc = jax.random.normal(kw, (32, 1), jnp.float32) / jnp.sqrt(32.0)
    bc = jax.random.normal(kb, (1, 1), jnp.float32) * 0.05
    return {"features": feats, "classifier": (wc, bc)}


def pack_params(params):
    """Pack parameters into 4 resident arrays (w0 f32, w1..3 bf16, biases, wc col)."""
    (w0, b0) = params["features"][0]
    w0_pad = jnp.zeros((PAD, PAD), jnp.float32).at[:w0.shape[0], :w0.shape[1]].set(w0)

    bias_rows = [jnp.zeros((PAD,), jnp.float32).at[:b0.shape[0]].set(b0)]
    wr_planes = []
    for (w, b) in params["features"][1:]:
        din, dout = w.shape
        wr_planes.append(jnp.zeros((PAD, PAD), jnp.float32).at[:din, :dout].set(w))
        bias_rows.append(jnp.zeros((PAD,), jnp.float32).at[:dout].set(b))
    wr_slab = jnp.stack(wr_planes).astype(jnp.bfloat16)          # (3, 128, 128) bf16

    wc, bc = params["classifier"]
    bias_rows.append(jnp.full((PAD,), bc[0, 0], jnp.float32))    # row 4: classifier bias
    while len(bias_rows) < _BIAS_ROWS:
        bias_rows.append(jnp.zeros((PAD,), jnp.float32))
    b_slab = jnp.stack(bias_rows)                                # (8, 128) f32
    wc_col = jnp.zeros((PAD, 1), jnp.float32).at[:wc.shape[0], :].set(wc)
    return w0_pad, wr_slab, b_slab, wc_col


@jax.jit
def mil_cli_forward(x, w0_pad, wr_slab, b_slab, wc_col):
    """Returns (Y, Y_ins) matching MIL_reg_Ins_cli.forward with pooling='mean'."""
    n = x.shape[0]
    tile_n = _choose_tile_n(n)
    num_tiles = pl.cdiv(n, tile_n)
    kernel = functools.partial(mil_cli_kernel, n_valid=n, tile_n=tile_n)

    y_tiles, psums = pl.pallas_call(
        kernel,
        out_shape=(jax.ShapeDtypeStruct((num_tiles, 1, tile_n), jnp.float32),
                   jax.ShapeDtypeStruct((num_tiles, 1, 1), jnp.float32)),
        grid=(num_tiles,),
        in_specs=[
            pl.BlockSpec((tile_n, F_IN), lambda i: (i, 0)),               # stream x raw
            pl.BlockSpec((PAD, PAD), lambda i: (0, 0)),                   # resident w0 f32
            pl.BlockSpec((NUM_LAYERS - 1, PAD, PAD), lambda i: (0, 0, 0)),  # resident w1..3
            pl.BlockSpec((_BIAS_ROWS, PAD), lambda i: (0, 0)),            # resident biases
            pl.BlockSpec((PAD, 1), lambda i: (0, 0)),                     # resident wc col
        ],
        out_specs=(
            pl.BlockSpec((1, 1, tile_n), lambda i: (i, 0, 0)),            # lane-dense Y_ins
            pl.BlockSpec((1, 1, 1), lambda i: (i, 0, 0)),                 # partial sums
        ),
        scratch_shapes=[pltpu.VMEM((tile_n, PAD), jnp.float32)],
        compiler_params=pltpu.CompilerParams(
            dimension_semantics=("parallel",)),
    )(x, w0_pad, wr_slab, b_slab, wc_col)

    y_ins = y_tiles.reshape(-1, 1)[:n]                # (n, 1)
    if n == 1:
        Y = y_ins                                     # module: Y = Y_ins when n == 1
    else:
        Y = jnp.sum(psums).reshape(1) / n             # torch.mean(Y_ins, 0) -> (1,)
    return Y, y_ins


def mil_cli_forward_ref(x, params):
    """Pure-JAX reference mirroring the kernel's precision choices."""
    (w0, b0) = params["features"][0]
    h = jnp.dot(x, w0, precision=jax.lax.Precision.HIGHEST) + b0
    h = jnp.maximum(h, 0.0)
    for (w, b) in params["features"][1:]:
        h = jnp.dot(h.astype(jnp.bfloat16), w.astype(jnp.bfloat16),
                    preferred_element_type=jnp.float32) + b
        h = jnp.maximum(h, 0.0)
    wc, bc = params["classifier"]
    z = jnp.sum(h * wc[:, 0], axis=-1, keepdims=True) + bc[0, 0]
    y_ins = _selu(z)
    return jnp.mean(y_ins, axis=0), y_ins


if __name__ == "__main__":
    key = jax.random.PRNGKey(0)
    key, kx = jax.random.split(key)

    # bag of N=200 instances, each a 103-dim clinical feature vector
    N, F = 200, 103
    x = jax.random.normal(kx, (N, F), jnp.float32)

    params = init_params(key)
    packed = pack_params(params)

    Y, Y_ins = mil_cli_forward(x, *packed)
    jax.block_until_ready((Y, Y_ins))
    A = 0   # matches the module's constant attention return

    Y_ref, Y_ins_ref = mil_cli_forward_ref(x, params)
    assert Y.shape == (1,) and Y_ins.shape == (N, 1)
    assert jnp.allclose(Y_ins, Y_ins_ref, atol=5e-3, rtol=5e-3)
    assert jnp.allclose(Y, Y_ref, atol=5e-3, rtol=5e-3)

    print("KERNEL_OK")
</pallas_src>

<mosaic_0001>
module attributes {stable_mosaic.version = 11 : i64} {
  func.func @mil_cli_kernel(%arg0: i32, %arg1: memref<128x103xf32, #tpu.memory_space<vmem>>, %arg2: memref<128x128xf32, #tpu.memory_space<vmem>>, %arg3: memref<3x128x128xbf16, #tpu.memory_space<vmem>>, %arg4: memref<8x128xf32, #tpu.memory_space<vmem>>, %arg5: memref<128x1xf32, #tpu.memory_space<vmem>>, %arg6: memref<1x1x128xf32, #tpu.memory_space<vmem>>, %arg7: memref<1x1x1xf32, #tpu.memory_space<vmem>>, %arg8: memref<128x128xf32, #tpu.memory_space<vmem>>) attributes {dimension_semantics = [#tpu.dimension_semantics<parallel>], iteration_bounds = array<i64: 2>, scalar_prefetch = 0 : i64, scratch_operands = 1 : i64, tpu.core_type = #tpu.core_type<tc>, window_params = [{transform_indices = @transform_0, window_bounds = array<i64: 128, 103>}, {pipeline_mode = #tpu.pipeline_mode<synchronous>, transform_indices = @transform_1, window_bounds = array<i64: 128, 128>}, {pipeline_mode = #tpu.pipeline_mode<synchronous>, transform_indices = @transform_2, window_bounds = array<i64: 3, 128, 128>}, {pipeline_mode = #tpu.pipeline_mode<synchronous>, transform_indices = @transform_3, window_bounds = array<i64: 8, 128>}, {pipeline_mode = #tpu.pipeline_mode<synchronous>, transform_indices = @transform_4, window_bounds = array<i64: 128, 1>}, {transform_indices = @transform_5, window_bounds = array<i64: 1, 1, 128>}, {transform_indices = @transform_6, window_bounds = array<i64: 1, 1, 1>}]} {
    %cst = arith.constant 0.000000e+00 : f32
    %0 = vector.broadcast %cst : f32 to vector<128x25xf32>
    %c0 = arith.constant 0 : index
    %c103 = arith.constant 103 : index
    %1 = vector.load %arg8[%c0, %c103] : memref<128x128xf32, #tpu.memory_space<vmem>>, vector<128x25xf32>
    tpu.vector_store %arg8[%c0, %c103], %0 {strides = array<i32>} : memref<128x128xf32, #tpu.memory_space<vmem>>, vector<128x25xf32>,
    %c0_0 = arith.constant 0 : index
    %c0_1 = arith.constant 0 : index
    %2 = vector.load %arg1[%c0_0, %c0_1] : memref<128x103xf32, #tpu.memory_space<vmem>>, vector<128x103xf32>
    %c0_2 = arith.constant 0 : index
    %c0_3 = arith.constant 0 : index
    %3 = vector.load %arg8[%c0_2, %c0_3] : memref<128x128xf32, #tpu.memory_space<vmem>>, vector<128x103xf32>
    tpu.vector_store %arg8[%c0_2, %c0_3], %2 {strides = array<i32>} : memref<128x128xf32, #tpu.memory_space<vmem>>, vector<128x103xf32>,
    %c0_4 = arith.constant 0 : index
    %c0_5 = arith.constant 0 : index
    %4 = vector.load %arg8[%c0_4, %c0_5] : memref<128x128xf32, #tpu.memory_space<vmem>>, vector<128x128xf32>
    %c0_6 = arith.constant 0 : index
    %c0_7 = arith.constant 0 : index
    %5 = vector.load %arg2[%c0_6, %c0_7] : memref<128x128xf32, #tpu.memory_space<vmem>>, vector<128x128xf32>
    %cst_8 = arith.constant dense<0.000000e+00> : vector<128x128xf32>
    %6 = tpu.matmul %4, %5, %cst_8 {dimension_numbers = #tpu.dot_dimension_numbers<[1], [0], [0], [1], [0, 0, 1, 1], [], []>} : vector<128x128xf32>, vector<128x128xf32>, vector<128x128xf32> -> vector<128x128xf32>
    %c0_9 = arith.constant 0 : index
    %c0_10 = arith.constant 0 : index
    %7 = vector.load %arg4[%c0_9, %c0_10] : memref<8x128xf32, #tpu.memory_space<vmem>>, vector<1x128xf32>
    %8 = vector.broadcast %7 : vector<1x128xf32> to vector<128x128xf32>
    %9 = arith.addf %6, %8 : vector<128x128xf32>
    %cst_11 = arith.constant 0.000000e+00 : f32
    %10 = vector.broadcast %cst_11 : f32 to vector<128x128xf32>
    %11 = arith.maximumf %9, %10 : vector<128x128xf32>
    %12 = arith.truncf %11 : vector<128x128xf32> to vector<128x128xbf16>
    %c0_12 = arith.constant 0 : index
    %c0_13 = arith.constant 0 : index
    %c0_14 = arith.constant 0 : index
    %13 = vector.load %arg3[%c0_12, %c0_13, %c0_14] : memref<3x128x128xbf16, #tpu.memory_space<vmem>>, vector<1x128x128xbf16>
    %14 = vector.shape_cast %13 : vector<1x128x128xbf16> to vector<128x128xbf16>
    %cst_15 = arith.constant dense<0.000000e+00> : vector<128x128xf32>
    %15 = tpu.matmul %12, %14, %cst_15 {dimension_numbers = #tpu.dot_dimension_numbers<[1], [0], [0], [1], [0, 0, 1, 1], [], []>} : vector<128x128xbf16>, vector<128x128xbf16>, vector<128x128xf32> -> vector<128x128xf32>
    %c1 = arith.constant 1 : index
    %c0_16 = arith.constant 0 : index
    %16 = vector.load %arg4[%c1, %c0_16] : memref<8x128xf32, #tpu.memory_space<vmem>>, vector<1x128xf32>
    %17 = vector.broadcast %16 : vector<1x128xf32> to vector<128x128xf32>
    %18 = arith.addf %15, %17 : vector<128x128xf32>
    %cst_17 = arith.constant 0.000000e+00 : f32
    %19 = vector.broadcast %cst_17 : f32 to vector<128x128xf32>
    %20 = arith.maximumf %18, %19 : vector<128x128xf32>
    %21 = arith.truncf %20 : vector<128x128xf32> to vector<128x128xbf16>
    %c1_18 = arith.constant 1 : index
    %c0_19 = arith.constant 0 : index
    %c0_20 = arith.constant 0 : index
    %22 = vector.load %arg3[%c1_18, %c0_19, %c0_20] : memref<3x128x128xbf16, #tpu.memory_space<vmem>>, vector<1x128x128xbf16>
    %23 = vector.shape_cast %22 : vector<1x128x128xbf16> to vector<128x128xbf16>
    %cst_21 = arith.constant dense<0.000000e+00> : vector<128x128xf32>
    %24 = tpu.matmul %21, %23, %cst_21 {dimension_numbers = #tpu.dot_dimension_numbers<[1], [0], [0], [1], [0, 0, 1, 1], [], []>} : vector<128x128xbf16>, vector<128x128xbf16>, vector<128x128xf32> -> vector<128x128xf32>
    %c2 = arith.constant 2 : index
    %c0_22 = arith.constant 0 : index
    %25 = vector.load %arg4[%c2, %c0_22] : memref<8x128xf32, #tpu.memory_space<vmem>>, vector<1x128xf32>
    %26 = vector.broadcast %25 : vector<1x128xf32> to vector<128x128xf32>
    %27 = arith.addf %24, %26 : vector<128x128xf32>
    %cst_23 = arith.constant 0.000000e+00 : f32
    %28 = vector.broadcast %cst_23 : f32 to vector<128x128xf32>
    %29 = arith.maximumf %27, %28 : vector<128x128xf32>
    %30 = arith.truncf %29 : vector<128x128xf32> to vector<128x128xbf16>
    %c2_24 = arith.constant 2 : index
    %c0_25 = arith.constant 0 : index
    %c0_26 = arith.constant 0 : index
    %31 = vector.load %arg3[%c2_24, %c0_25, %c0_26] : memref<3x128x128xbf16, #tpu.memory_space<vmem>>, vector<1x128x128xbf16>
    %32 = vector.shape_cast %31 : vector<1x128x128xbf16> to vector<128x128xbf16>
    %cst_27 = arith.constant dense<0.000000e+00> : vector<128x128xf32>
    %33 = tpu.matmul %30, %32, %cst_27 {dimension_numbers = #tpu.dot_dimension_numbers<[1], [0], [0], [1], [0, 0, 1, 1], [], []>} : vector<128x128xbf16>, vector<128x128xbf16>, vector<128x128xf32> -> vector<128x128xf32>
    %c3 = arith.constant 3 : index
    %c0_28 = arith.constant 0 : index
    %34 = vector.load %arg4[%c3, %c0_28] : memref<8x128xf32, #tpu.memory_space<vmem>>, vector<1x128xf32>
    %35 = vector.broadcast %34 : vector<1x128xf32> to vector<128x128xf32>
    %36 = arith.addf %33, %35 : vector<128x128xf32>
    %cst_29 = arith.constant 0.000000e+00 : f32
    %37 = vector.broadcast %cst_29 : f32 to vector<128x128xf32>
    %38 = arith.maximumf %36, %37 : vector<128x128xf32>
    %39 = tpu.transpose %38, [1, 0] : vector<128x128xf32> -> vector<128x128xf32>
    %c0_30 = arith.constant 0 : index
    %c0_31 = arith.constant 0 : index
    %40 = vector.load %arg5[%c0_30, %c0_31] : memref<128x1xf32, #tpu.memory_space<vmem>>, vector<128x1xf32>
    %41 = vector.broadcast %40 : vector<128x1xf32> to vector<128x128xf32>
    %42 = arith.mulf %39, %41 : vector<128x128xf32>
    %cst_32 = arith.constant dense<0.000000e+00> : vector<128xf32>
    %43 = vector.multi_reduction <add>, %42, %cst_32 [0] : vector<128x128xf32> to vector<128xf32>
    %44 = vector.shape_cast %43 : vector<128xf32> to vector<1x128xf32>
    %c4 = arith.constant 4 : index
    %c0_33 = arith.constant 0 : index
    %45 = vector.load %arg4[%c4, %c0_33] : memref<8x128xf32, #tpu.memory_space<vmem>>, vector<1x1xf32>
    %46 = vector.broadcast %45 : vector<1x1xf32> to vector<1x128xf32>
    %47 = arith.addf %44, %46 : vector<1x128xf32>
    %cst_34 = arith.constant 0.000000e+00 : f32
    %48 = vector.broadcast %cst_34 : f32 to vector<1x128xf32>
    %49 = arith.cmpf ogt, %47, %48 : vector<1x128xf32>
    %50 = math.exp %47 : vector<1x128xf32>
    %cst_35 = arith.constant 1.000000e+00 : f32
    %51 = vector.broadcast %cst_35 : f32 to vector<1x128xf32>
    %52 = arith.subf %50, %51 : vector<1x128xf32>
    %cst_36 = arith.constant 1.67326319 : f32
    %53 = vector.broadcast %cst_36 : f32 to vector<1x128xf32>
    %54 = arith.mulf %53, %52 : vector<1x128xf32>
    %55 = arith.select %49, %47, %54 : vector<1x128xi1>, vector<1x128xf32>
    %cst_37 = arith.constant 1.05070102 : f32
    %56 = vector.broadcast %cst_37 : f32 to vector<1x128xf32>
    %57 = arith.mulf %56, %55 : vector<1x128xf32>
    %58 = vector.shape_cast %57 : vector<1x128xf32> to vector<1x1x128xf32>
    %c0_38 = arith.constant 0 : index
    %c0_39 = arith.constant 0 : index
    %c0_40 = arith.constant 0 : index
    %59 = vector.load %arg6[%c0_38, %c0_39, %c0_40] : memref<1x1x128xf32, #tpu.memory_space<vmem>>, vector<1x1x128xf32>
    tpu.vector_store %arg6[%c0_38, %c0_39, %c0_40], %58 {strides = array<i32>} : memref<1x1x128xf32, #tpu.memory_space<vmem>>, vector<1x1x128xf32>,
    %60 = tpu.iota {dimensions = array<i32: 1>} : vector<1x128xi32>
    %c128_i32 = arith.constant 128 : i32
    %61 = arith.muli %arg0, %c128_i32 : i32
    %62 = vector.broadcast %61 : i32 to vector<1x128xi32>
    %63 = arith.addi %62, %60 : vector<1x128xi32>
    %c200_i32 = arith.constant 200 : i32
    %64 = vector.broadcast %c200_i32 : i32 to vector<1x128xi32>
    %65 = arith.cmpi slt, %63, %64 : vector<1x128xi32>
    %cst_41 = arith.constant 0.000000e+00 : f32
    %66 = vector.broadcast %cst_41 : f32 to vector<1x128xf32>
    %67 = arith.select %65, %57, %66 : vector<1x128xi1>, vector<1x128xf32>
    %cst_42 = arith.constant dense<0.000000e+00> : vector<1xf32>
    %68 = vector.multi_reduction <add>, %67, %cst_42 [1] : vector<1x128xf32> to vector<1xf32>
    %69 = vector.shape_cast %68 : vector<1xf32> to vector<1x1xf32>
    %70 = vector.shape_cast %69 : vector<1x1xf32> to vector<1x1x1xf32>
    %c0_43 = arith.constant 0 : index
    %c0_44 = arith.constant 0 : index
    %c0_45 = arith.constant 0 : index
    %71 = vector.load %arg7[%c0_43, %c0_44, %c0_45] : memref<1x1x1xf32, #tpu.memory_space<vmem>>, vector<1x1x1xf32>
    tpu.vector_store %arg7[%c0_43, %c0_44, %c0_45], %70 {strides = array<i32>} : memref<1x1x1xf32, #tpu.memory_space<vmem>>, vector<1x1x1xf32>,
    return
  }
  func.func @transform_0(%arg0: i32) -> (i32, i32) {
    %c0_i32 = arith.constant 0 : i32
    %c0_i32_0 = arith.constant 0 : i32
    return %arg0, %c0_i32 : i32, i32
  }
  func.func @transform_1(%arg0: i32) -> (i32, i32) {
    %c0_i32 = arith.constant 0 : i32
    %c0_i32_0 = arith.constant 0 : i32
    %c0_i32_1 = arith.constant 0 : i32
    return %c0_i32, %c0_i32_0 : i32, i32
  }
  func.func @transform_2(%arg0: i32) -> (i32, i32, i32) {
    %c0_i32 = arith.constant 0 : i32
    %c0_i32_0 = arith.constant 0 : i32
    %c0_i32_1 = arith.constant 0 : i32
    %c0_i32_2 = arith.constant 0 : i32
    return %c0_i32, %c0_i32_0, %c0_i32_1 : i32, i32, i32
  }
  func.func @transform_3(%arg0: i32) -> (i32, i32) {
    %c0_i32 = arith.constant 0 : i32
    %c0_i32_0 = arith.constant 0 : i32
    %c0_i32_1 = arith.constant 0 : i32
    return %c0_i32, %c0_i32_0 : i32, i32
  }
  func.func @transform_4(%arg0: i32) -> (i32, i32) {
    %c0_i32 = arith.constant 0 : i32
    %c0_i32_0 = arith.constant 0 : i32
    %c0_i32_1 = arith.constant 0 : i32
    return %c0_i32, %c0_i32_0 : i32, i32
  }
  func.func @transform_5(%arg0: i32) -> (i32, i32, i32) {
    %c0_i32 = arith.constant 0 : i32
    %c0_i32_0 = arith.constant 0 : i32
    %c0_i32_1 = arith.constant 0 : i32
    return %arg0, %c0_i32, %c0_i32_0 : i32, i32, i32
  }
  func.func @transform_6(%arg0: i32) -> (i32, i32, i32) {
    %c0_i32 = arith.constant 0 : i32
    %c0_i32_0 = arith.constant 0 : i32
    %c0_i32_1 = arith.constant 0 : i32
    return %arg0, %c0_i32, %c0_i32_0 : i32, i32, i32
  }
}

</mosaic_0001>

<bundles_post_ra>
// kernel: mil_cli_forward.1
= control target key start
LH: loop header
LB: loop body
LE: loop exit
PB: predicated region body
PF: predicated region fallthrough
CT: control target
= control target key end

     0   :  { %s2362_s0 = inlined_call_operand.hbm [shape: f32[200,103], index: 0, kind: input, shape index: {}]   ;;  %s2363_s1 = inlined_call_operand.vmem [shape: f32[128,128], index: 1, kind: input, shape index: {}]   ;;  %s2364_s2 = inlined_call_operand.hbm [shape: bf16[3,128,128], index: 2, kind: input, shape index: {}]   ;;  %s2365_s3 = inlined_call_operand.hbm [shape: f32[8,128], index: 3, kind: input, shape index: {}]   ;;  %s2366_s4 = inlined_call_operand.vmem [shape: f32[128,1], index: 4, kind: input, shape index: {}]   ;;  %s2367_s5 = inlined_call_operand.hbm [shape: f32[2,1,128], index: 5, kind: output, shape index: {0}]   ;;  %s2368_s6 = inlined_call_operand.vmem [shape: f32[2,1,1], index: 6, kind: output, shape index: {1}]  }
   0x1   :  { %2372 = sst [smem:[#allocation13_spill]] %s2364_s2 }
   0x2   :  { %12 = vsyncpa [#allocation4], 0 }
   0x3   :  { %14 = vsyncpa [#allocation4 + $0x1], 0 }
   0x4   :  { %15 = vsyncpa [#allocation7], 0 }
   0x5   :  { %16 = vsyncpa [#allocation5], 0 }
   0x6   :  { %18 = vsyncpa [#allocation5 + $0x1], 0  ;;  %s2023_s21 = smov 0   ;;  %s2025_s22 = smov 0  }
   0x7   :  { %s2027_s23 = smov 0   ;;  %s2029_s24 = smov 0  }
   0x8 LB: > { %s2044_s25 = sadd.s32 4294967295, %s1976_s24   ;;  %s1453_s26 = sadd.s32 4294967294, %s1976_s24   ;;  %s1976_s24 = sphi %s2029_s24, %s2388_s24   ;;  %s1972_s23 = sphi %s2027_s23, %s2387_s23   ;;  %s1968_s22 = sphi %s2025_s22, %s2386_s22   ;;  %s1964_s21 = sphi %s2023_s21, %s2385_s21  }
   0x9   : > { %s2048_s27 = sadd.s32 1, %s1976_s24   ;;  %s31_s28 = sadd.s32 1, %s1972_s23 }
   0xa   : > { %s28_s29 = ssub.s32 %s1976_s24, %s2048_s27  ;;  %p38_p0 = scmp.ne.s32.totalorder %s1972_s23, %s1968_s22 }
   0xb   : > { %p29_p1 = scmp.eq.s32.totalorder %s28_s29, 0  ;;  %p39_p2 = scmp.eq.s32.totalorder %s1976_s24, 0 }
   0xc   : > { %p44_p3 = scmp.ne.s32.totalorder %s1968_s22, %s1964_s21  ;;  %p2369_p4 = scmp.eq.s32.totalorder %s2044_s25, 0 }
   0xd   : > { %s2060_s30 = scalar_select %p29_p1, %s1972_s23, %s31_s28  }
   0xe   : > { %p2062_p5 = por %p39_p2, %p38_p0  ;;  %p2068_p6 = por %p2369_p4, %p44_p3 }
   0xf   : > { %p152_p7 = scmp.eq.s32.totalorder %s2044_s25, 1  ;;  %p158_p8 = scmp.eq.s32.totalorder %s1453_s26, 1 }
  0x10   : > { %s2374_s8 = scalar_select %p2068_p6, 1, 0 }
  0x11   : > { %p1454_p9 = scmp.ge.s32.totalorder %s1976_s24, 1  ;;  %p191_p10 = scmp.lt.s32.totalorder %s1976_s24, 3 }
  0x12   : > { %p2075_p11 = por %p152_p7, %p38_p0  ;;  %p2079_p12 = por %p158_p8, %p44_p3 }
  0x13   : > { %p2083_p13 = pnand %p1454_p9, %p191_p10  ;;  %s1978_s12 = smov [#allocation6]  }
  0x14   : > { %s2375_s9 = scalar_select %p2075_p11, 1, 0 }
  0x15   : > { %s2376_s10 = scalar_select %p2079_p12, 1, 0 }
  0x16   : > { %p1746_p1 = pneg %p2083_p13  ;;  %s206_s13 = sshll.u32 %s1978_s12, 4  ;;  %s207_s13 = int_to_ptr.vmem [resolvable:$true] %s206_s13 }
  0x17   : > { %s1979_s15 = smov [#allocation8]   ;;  %s1841_s17 = scalar_lea.vmem %s207_s13, 3072 }
  0x18   : > { %p2091_p2 = pnand %p1746_p1, %p2369_p4  ;;  %s220_s16 = sshll.u32 %s1979_s15, 4  ;;  %s221_s16 = int_to_ptr.vmem [resolvable:$true] %s220_s16 }
  0x19   : > { %p1842_p3 = scmp.ne.s32.totalorder %s207_s13, %s1841_s17  ;;  %p1849_p9 = scmp.lt.s32.totalorder %s207_s13, %s207_s13 }
  0x1a   : > { %p1832_p0 = pneg %p2091_p2  ;;  %p1850_p10 = scmp.lt.s32.totalorder %s1841_s17, %s1841_s17 }
  0x1c   : > { %p1844_p7 = pnand %p1842_p3, %p1832_p0  ;;  %p1851_p12 = por %p1850_p10, %p1849_p9 }
  0x1e   : > { %p1845_p8 = pneg %p1844_p7 }
  0x20   : > { %p1852_p1 = pnand %p1851_p12, %p1845_p8 }
  0x22   : > { %1855 = shalt.err (!%p1852_p1)
}
  0x23   : > { %s1980_s18 = smov 64   ;;  %s1981_s19 = smov 4  }
  0x24   : > { %s2379_s2 = sld [smem:[#allocation13_spill]]  ;;  %s1867_s28 = scalar_lea.vmem %s221_s16, 128 }
  0x25   : > { %p1868_p4 = scmp.ne.s32.totalorder %s221_s16, %s1867_s28  ;;  %p1875_p11 = scmp.lt.s32.totalorder %s221_s16, %s221_s16 }
  0x26   : > { %p1876_p6 = scmp.lt.s32.totalorder %s1867_s28, %s1867_s28 }
  0x27   : > { %p1870_p3 = pnand %p1868_p4, %p1832_p0 }
  0x28   : > { %p1877_p9 = por %p1876_p6, %p1875_p11 }
  0x29   : > { %p1871_p7 = pneg %p1870_p3 }
  0x2a   : > { %1749 = dma.hbm_to_vmem [thread:$0]  (!%p2091_p2), %s2379_s2, 3072, %s207_s13, [#allocation7], %s1980_s18, %s1980_s18, %s1981_s19  }
  0x2b   : > { %p1878_p12 = pnand %p1877_p9, %p1871_p7 }
  0x2d   : > { %1881 = shalt.err (!%p1878_p12)
}
  0x2e   : > { %1752 = dma.hbm_to_vmem [thread:$0]  (!%p2091_p2), %s2365_s3, 128, %s221_s16, [#allocation7]  }
  0x2f   : > { %p1457_p8 = scmp.ge.s32.totalorder %s1976_s24, 2 }
  0x31   : > { %230 = sbr.rel (%p1457_p8) target bundleno = 86 (0x56), region = 32 }
  0x36   : > { %233 = sbr.rel (!%p2062_p5) target bundleno = 86 (0x56), region = 36  ;;  %s234_s13 = sand.u32 (%p2062_p5), 1, %s1972_s23  }
  0x37   : > { %s1459_s15 = sshll.u32 (%p2062_p5), %s1976_s24, 4  ;;  %s1458_s17 = sshll.u32 (%p2062_p5), %s234_s13, 7 }
  0x38   : > { %s240_s18 = ssub.s32 (%p2062_p5), 25, %s1459_s15  ;;  %s2123_s19 = scalar_lea.sflag (%p2062_p5), [#allocation4], %s234_s13 }
  0x39   : > { %p241_p4 = scmp.lt.s32.totalorder (%p2062_p5), %s240_s18, 16  ;;  %s238_s20 = scalar_lea.vmem (%p2062_p5), [#allocation3], %s1458_s17 }
  0x3b   : > { %s2390_s18 = smov (!%p241_p4, %s240_s18), 16 }
  0x3c   : > { %s2120_s14 = sshll.u32 %s2390_s18, 7 }
  0x3d   : > { %s245_s16 = ssub.s32 2048, %s2120_s14 }
  0x3e   : > { %246 = vsyncadd %s2123_s19, %s245_s16  ;;  %p1461_p5 = scmp.ne.s32.totalorder %s2120_s14, 0  ;;  %s1502_s7 = sshll.u32 %s1976_s24, 11 }
  0x3f   : > { %s2131_s29 = scalar_lea.hbm %s2362_s0, %s1502_s7  ;;  %s251_s12 = sshll.u32 %s238_s20, 4  ;;  %s2133_s12 = int_to_ptr.vmem [resolvable:$true] %s251_s12 }
  0x40   : > { %s1882_s13 = scalar_lea.hbm %s2131_s29, %s2120_s14  ;;  %s1886_s18 = scalar_lea.hbm %s2362_s0, 3200 }
  0x41   : > { %p1883_p6 = scmp.ne.s32.totalorder %s2131_s29, %s1882_s13  ;;  %p1887_p0 = scmp.lt.s32.totalorder %s2131_s29, %s2362_s0 }
  0x42   : > { %p1888_p10 = scmp.lt.s32.totalorder %s1886_s18, %s1882_s13 }
  0x43   : > { %p1884_p11 = pnand %p1883_p6, %p1461_p5 }
  0x44   : > { %p1889_p1 = por %p1888_p10, %p1887_p0 }
  0x45   : > { %p1885_p2 = pneg %p1884_p11 }
  0x47   : > { %p1890_p3 = pnand %p1889_p1, %p1885_p2 }
  0x49   : > { %1893 = shalt.err (!%p1890_p3)
}
  0x4a   : > { %s1894_s20 = scalar_lea.vmem %s2133_s12, %s2120_s14  ;;  %s1982_s7 = smov [#allocation3]  }
  0x4b   : > { %p1895_p7 = scmp.ne.s32.totalorder %s2133_s12, %s1894_s20  ;;  %s1898_s26 = sshll.u32 %s1982_s7, 4  ;;  %s1899_s26 = int_to_ptr.vmem [resolvable:$false] %s1898_s26 }
  0x4c   : > { %s1900_s28 = scalar_lea.vmem %s1899_s26, 4096  ;;  %p1901_p4 = scmp.lt.s32.totalorder %s2133_s12, %s1899_s26 }
  0x4d   : > { %p1896_p9 = pnand %p1895_p7, %p1461_p5  ;;  %p1902_p6 = scmp.lt.s32.totalorder %s1900_s28, %s1894_s20 }
  0x4f   : > { %p1897_p12 = pneg %p1896_p9  ;;  %p1903_p11 = por %p1902_p6, %p1901_p4 }
  0x51   : > { %p1904_p0 = pnand %p1903_p11, %p1897_p12 }
  0x53   : > { %1907 = shalt.err (!%p1904_p0)
}
  0x54   : > { %s1983_s2 = smov 128   ;;  %s1984_s13 = smov 8  }
  0x55   : > { %257 = dma.hbm_to_vmem [thread:$0]  (%p1461_p5), %s2131_s29, %s2120_s14, %s2133_s12, %s2123_s19, %s1983_s2, %s1983_s2, %s1984_s13  }
  0x56 PF: > { %263 = sbr.rel (%p2083_p13) target bundleno = 1311 (0x51f), region = 40  ;;  %s2162_s15 = sand.u32 (!%p2083_p13), 1, %s1968_s22  }
  0x57   : > { %s1466_s17 = sshll.u32 (!%p2083_p13), %s2162_s15, 7  ;;  %s266_s18 = scalar_lea.sflag (!%p2083_p13), [#allocation4], %s2162_s15 }
  0x58   : > { %s2166_s16 = scalar_lea.vmem (!%p2083_p13), [#allocation3], %s1466_s17  ;;  %p2380_p2 = scmp.ne.s32.totalorder (!%p2083_p13), %s2374_s8, 0 }
  0x5b   : > { %1951 = dma.done.wait (%p2380_p2), %s266_s18, 2048  }
  0x5c   : > { %1953 = vsyncadd (%p2380_p2), %s266_s18, 4294965248  ;;  %p2381_p5 = scmp.eq.s32.totalorder %s2044_s25, 0 }
  0x5e   : > { %1955 = dma.done.wait (%p2381_p5), [#allocation7], 3200   ;;  %p2382_p13 = pmov %p2381_p5 }
  0x5f   : > { %vm317_vm0 = vcmask 1048376   ;;  %v1985_v0 = vmov 0.0   ;;  %v398_v1 = vld [vmem:[%s2363_s1 + $0x78] sm:$0xff]  ;;  %v397_v2 = vld [vmem:[%s2363_s1 + $0x70] sm:$0xff]  ;;  %v396_v3 = vld [vmem:[%s2363_s1 + $0x68] sm:$0xff]  ;;  %vm350_vm1 = vcmask 842752  }
  0x60   : > { %1957 = vsyncadd (%p2382_p13), [#allocation7], 4294964096  ;;  %318 = vst.msk [vmem:[#allocation2] sm:$0xff] %vm317_vm0, %v1985_v0  ;;  %1583 = vmatprep.subr.mxu0 %v398_v1  ;;  %v395_v4 = vld [vmem:[%s2363_s1 + $0x60] sm:$0xff]  ;;  %v394_v5 = vld [vmem:[%s2363_s1 + $0x58] sm:$0xff]  ;;  %s1498_s29 = sshll.u32 %s2044_s25, 7 }
  0x61   : > { %319 = vst.msk [vmem:[#allocation2 + $0x8] sm:$0xff] %vm317_vm0, %v1985_v0  ;;  %320 = vst.msk [vmem:[#allocation2 + $0x10] sm:$0xff] %vm317_vm0, %v1985_v0  ;;  %1584 = vmatpush3.msra.mxu0 %v398_v1  ;;  %v334_v6 = vld [vmem:[%s2166_s16] sm:$0xff]  ;;  %v335_v7 = vld [vmem:[%s2166_s16 + $0x8] sm:$0xff]  ;;  %vm1324_vm4 = vcmask 1040384   ;;  %s302_s12 = scalar_lea.vmem [#allocation9], %s2162_s15 }
  0x62   : > { %321 = vst.msk [vmem:[#allocation2 + $0x18] sm:$0xff] %vm317_vm0, %v1985_v0  ;;  %322 = vst.msk [vmem:[#allocation2 + $0x20] sm:$0xff] %vm317_vm0, %v1985_v0  ;;  %1585 = vmatprep.subr.mxu0 %v397_v2  ;;  %v393_v8 = vld [vmem:[%s2363_s1 + $0x50] sm:$0xff]  ;;  %v337_v10 = vld [vmem:[%s2166_s16 + $0x18] sm:$0xff]  ;;  %s1499_s20 = sshll.u32 %s2044_s25, 4  ;;  %s1346_s7 = sshll.u32 %s302_s12, 4  ;;  %s1347_s7 = int_to_ptr.vmem [resolvable:$true] %s1346_s7 }
  0x63   : > { %323 = vst.msk [vmem:[#allocation2 + $0x28] sm:$0xff] %vm317_vm0, %v1985_v0  ;;  %324 = vst.msk [vmem:[#allocation2 + $0x30] sm:$0xff] %vm317_vm0, %v1985_v0  ;;  %1586 = vmatpush3.msra.mxu0 %v397_v2  ;;  %v336_v9 = vld [vmem:[%s2166_s16 + $0x10] sm:$0xff]  ;;  %v338_v11 = vld [vmem:[%s2166_s16 + $0x20] sm:$0xff]  ;;  %s1344_s2 = scalar_lea.hbm %s2367_s5, %s1499_s20  ;;  %s1331_s13 = scalar_lea.sflag [#allocation5], %s2162_s15 }
  0x64   : > { %325 = vst.msk [vmem:[#allocation2 + $0x38] sm:$0xff] %vm317_vm0, %v1985_v0  ;;  %326 = vst.msk [vmem:[#allocation2 + $0x40] sm:$0xff] %vm317_vm0, %v1985_v0  ;;  %1587 = vmatprep.subr.mxu0 %v396_v3  ;;  %v339_v12 = vld [vmem:[%s2166_s16 + $0x28] sm:$0xff]  ;;  %v340_v13 = vld [vmem:[%s2166_s16 + $0x30] sm:$0xff]  ;;  %s1908_s17 = scalar_lea.vmem %s1347_s7, 16  ;;  %p2383_p1 = scmp.ne.s32.totalorder %s2375_s9, 0 }
  0x65   : > { %327 = vst.msk [vmem:[#allocation2 + $0x48] sm:$0xff] %vm317_vm0, %v1985_v0  ;;  %328 = vst.msk [vmem:[#allocation2 + $0x50] sm:$0xff] %vm317_vm0, %v1985_v0  ;;  %1588 = vmatpush3.msra.mxu0 %v396_v3  ;;  %v341_v14 = vld [vmem:[%s2166_s16 + $0x38] sm:$0xff]  ;;  %v392_v15 = vld [vmem:[%s2363_s1 + $0x48] sm:$0xff]  ;;  %p1909_p10 = scmp.ne.s32.totalorder %s1347_s7, %s1908_s17  ;;  %s1987_s18 = smov [#allocation9]  }
  0x66   : > { %329 = vst.msk [vmem:[#allocation2 + $0x58] sm:$0xff] %vm317_vm0, %v1985_v0  ;;  %330 = vst.msk [vmem:[#allocation2 + $0x60] sm:$0xff] %vm317_vm0, %v1985_v0  ;;  %1589 = vmatprep.subr.mxu0 %v395_v4  ;;  %v342_v16 = vld [vmem:[%s2166_s16 + $0x40] sm:$0xff]  ;;  %v343_v17 = vld [vmem:[%s2166_s16 + $0x48] sm:$0xff]  ;;  %s1912_s8 = sshll.u32 %s1987_s18, 4  ;;  %s1913_s8 = int_to_ptr.vmem [resolvable:$false] %s1912_s8 }
  0x67   : > { %331 = vst.msk [vmem:[#allocation2 + $0x68] sm:$0xff] %vm317_vm0, %v1985_v0  ;;  %332 = vst.msk [vmem:[#allocation2 + $0x70] sm:$0xff] %vm317_vm0, %v1985_v0  ;;  %1590 = vmatpush3.msra.mxu0 %v395_v4  ;;  %v344_v18 = vld [vmem:[%s2166_s16 + $0x50] sm:$0xff]  ;;  %v345_v19 = vld [vmem:[%s2166_s16 + $0x58] sm:$0xff]  ;;  %p1910_p3 = pnand %p1909_p10, %p2383_p1  ;;  %s1914_s11 = scalar_lea.vmem %s1913_s8, 32 }
  0x68   : > { %333 = vst.msk [vmem:[#allocation2 + $0x78] sm:$0xff] %vm317_vm0, %v1985_v0  ;;  %1591 = vmatprep.subr.mxu0 %v394_v5  ;;  %v346_v20 = vld [vmem:[%s2166_s16 + $0x60] sm:$0xff]  ;;  %v347_v21 = vld [vmem:[%s2166_s16 + $0x68] sm:$0xff]  ;;  %v348_v23 = vld [vmem:[%s2166_s16 + $0x70] sm:$0xff]  ;;  %p1915_p9 = scmp.lt.s32.totalorder %s1347_s7, %s1913_s8  ;;  %p1916_p12 = scmp.lt.s32.totalorder %s1914_s11, %s1908_s17 }
  0x69   : > { %351 = vst.msk [vmem:[#allocation2] sm:$0xff] %vm350_vm1, %v334_v6  ;;  %352 = vst.msk [vmem:[#allocation2 + $0x8] sm:$0xff] %vm350_vm1, %v335_v7  ;;  %1592 = vmatpush3.msra.mxu0 %v394_v5  ;;  %v391_v22 = vld [vmem:[%s2363_s1 + $0x40] sm:$0xff]  ;;  %v349_v24 = vld [vmem:[%s2166_s16 + $0x78] sm:$0xff]  ;;  %p1911_p7 = pneg %p1910_p3 }
  0x6a   : > { %353 = vst.msk [vmem:[#allocation2 + $0x10] sm:$0xff] %vm350_vm1, %v336_v9  ;;  %354 = vst.msk [vmem:[#allocation2 + $0x18] sm:$0xff] %vm350_vm1, %v337_v10  ;;  %1593 = vmatprep.subr.mxu0 %v393_v8  ;;  %v1804_v25 = vld [vmem:[#allocation6 + $0x38] sm:$0xff]   ;;  %v1805_v26 = vld [vmem:[#allocation6 + $0x30] sm:$0xff]   ;;  %p1917_p4 = por %p1916_p12, %p1915_p9 }
  0x6b   : > { %355 = vst.msk [vmem:[#allocation2 + $0x20] sm:$0xff] %vm350_vm1, %v338_v11  ;;  %356 = vst.msk [vmem:[#allocation2 + $0x28] sm:$0xff] %vm350_vm1, %v339_v12  ;;  %1594 = vmatpush3.msra.mxu0 %v393_v8  ;;  %1639 = vmatprep.subr.bf16.mxu1 %v1804_v25  ;;  %v390_v28 = vld [vmem:[%s2363_s1 + $0x38] sm:$0xff]  ;;  %v389_v29 = vld [vmem:[%s2363_s1 + $0x30] sm:$0xff] }
  0x6c   : > { %357 = vst.msk [vmem:[#allocation2 + $0x30] sm:$0xff] %vm350_vm1, %v340_v13  ;;  %358 = vst.msk [vmem:[#allocation2 + $0x38] sm:$0xff] %vm350_vm1, %v341_v14  ;;  %1595 = vmatprep.subr.mxu0 %v392_v15  ;;  %1640 = vmatpush3.bf16.msra.mxu1 %v1804_v25  ;;  %v388_v30 = vld [vmem:[%s2363_s1 + $0x28] sm:$0xff]  ;;  %v387_v32 = vld [vmem:[%s2363_s1 + $0x20] sm:$0xff]  ;;  %p1918_p6 = pnand %p1917_p4, %p1911_p7 }
  0x6d   : > { %359 = vst.msk [vmem:[#allocation2 + $0x40] sm:$0xff] %vm350_vm1, %v342_v16  ;;  %360 = vst.msk [vmem:[#allocation2 + $0x48] sm:$0xff] %vm350_vm1, %v343_v17  ;;  %1596 = vmatpush3.msra.mxu0 %v392_v15  ;;  %1641 = vmatprep.subr.bf16.mxu1 %v1805_v26  ;;  %v1806_v31 = vld [vmem:[#allocation6 + $0x28] sm:$0xff]   ;;  %v386_v33 = vld [vmem:[%s2363_s1 + $0x18] sm:$0xff] }
  0x6e   : > { %361 = vst.msk [vmem:[#allocation2 + $0x50] sm:$0xff] %vm350_vm1, %v344_v18  ;;  %362 = vst.msk [vmem:[#allocation2 + $0x58] sm:$0xff] %vm350_vm1, %v345_v19  ;;  %1597 = vmatprep.subr.mxu0 %v391_v22  ;;  %v1807_v34 = vld [vmem:[#allocation6 + $0x20] sm:$0xff]   ;;  %v385_v35 = vld [vmem:[%s2363_s1 + $0x10] sm:$0xff] }
  0x6f   : > { %363 = vst.msk [vmem:[#allocation2 + $0x60] sm:$0xff] %vm350_vm1, %v346_v20  ;;  %364 = vst.msk [vmem:[#allocation2 + $0x68] sm:$0xff] %vm350_vm1, %v347_v21  ;;  %1598 = vmatpush3.msra.mxu0 %v391_v22  ;;  %v1808_v36 = vld [vmem:[#allocation6 + $0x18] sm:$0xff]   ;;  %v384_v37 = vld [vmem:[%s2363_s1 + $0x8] sm:$0xff] }
  0x70   : > { %365 = vst.msk [vmem:[#allocation2 + $0x70] sm:$0xff] %vm350_vm1, %v348_v23  ;;  %366 = vst.msk [vmem:[#allocation2 + $0x78] sm:$0xff] %vm350_vm1, %v349_v24  ;;  %v367_v27 = vld [vmem:[#allocation2] sm:$0xff]  ;;  %1599 = vmatprep.subr.mxu0 %v390_v28  ;;  %1642 = vmatpush3.bf16.msra.mxu1 %v1805_v26  ;;  %v368_v39 = vld [vmem:[#allocation2 + $0x8] sm:$0xff] }
  0x71   : > { %1615 = vmatprep.mubr.f32.mxu0 %v367_v27  ;;  %1600 = vmatpush3.msra.mxu0 %v390_v28  ;;  %v383_v38 = vld [vmem:[%s2363_s1] sm:$0xff]  ;;  %v369_v40 = vld [vmem:[#allocation2 + $0x10] sm:$0xff]  ;;  %v370_v41 = vld [vmem:[#allocation2 + $0x18] sm:$0xff] }
  0x72   : > { %1601 = vmatprep.subr.mxu0 %v389_v29  ;;  %1643 = vmatprep.subr.bf16.mxu1 %v1806_v31  ;;  %v371_v42 = vld [vmem:[#allocation2 + $0x20] sm:$0xff]  ;;  %v372_v43 = vld [vmem:[#allocation2 + $0x28] sm:$0xff]  ;;  %v1809_v54 = vld [vmem:[#allocation6 + $0x10] sm:$0xff]  }
  0x73   : > { %1602 = vmatpush3.msra.mxu0 %v389_v29  ;;  %v373_v44 = vld [vmem:[#allocation2 + $0x30] sm:$0xff]  ;;  %v374_v45 = vld [vmem:[#allocation2 + $0x38] sm:$0xff]  ;;  %v1810_v55 = vld [vmem:[#allocation6 + $0x8] sm:$0xff]  }
  0x74   : > { %1603 = vmatprep.subr.mxu0 %v388_v30  ;;  %1644 = vmatpush3.bf16.msra.mxu1 %v1806_v31  ;;  %v375_v46 = vld [vmem:[#allocation2 + $0x40] sm:$0xff]  ;;  %v376_v47 = vld [vmem:[#allocation2 + $0x48] sm:$0xff]  ;;  %v1812_v57 = vld [vmem:[#allocation6 + $0x78] sm:$0xff]  }
  0x75   : > { %1604 = vmatpush3.msra.mxu0 %v388_v30  ;;  %1645 = vmatprep.subr.bf16.mxu1 %v1807_v34  ;;  %v377_v48 = vld [vmem:[#allocation2 + $0x50] sm:$0xff]  ;;  %v378_v49 = vld [vmem:[#allocation2 + $0x58] sm:$0xff]  ;;  %v1811_v56 = vld [vmem:[#allocation6] sm:$0xff]  }
  0x76   : > { %1605 = vmatprep.subr.mxu0 %v387_v32  ;;  %v379_v50 = vld [vmem:[#allocation2 + $0x60] sm:$0xff]  ;;  %v380_v51 = vld [vmem:[#allocation2 + $0x68] sm:$0xff]  ;;  %v1813_v58 = vld [vmem:[#allocation6 + $0x70] sm:$0xff]  }
  0x77   : > { %1606 = vmatpush3.msra.mxu0 %v387_v32  ;;  %v381_v52 = vld [vmem:[#allocation2 + $0x70] sm:$0xff]  ;;  %v382_v53 = vld [vmem:[#allocation2 + $0x78] sm:$0xff]  ;;  %v1814_v59 = vld [vmem:[#allocation6 + $0x68] sm:$0xff]  }
  0x78   : > { %1607 = vmatprep.subr.mxu0 %v386_v33  ;;  %1646 = vmatpush3.bf16.msra.mxu1 %v1807_v34  ;;  %v1815_v60 = vld [vmem:[#allocation6 + $0x60] sm:$0xff]   ;;  %v1816_v61 = vld [vmem:[#allocation6 + $0x58] sm:$0xff]  }
  0x79   : > { %1608 = vmatpush3.msra.mxu0 %v386_v33  ;;  %1647 = vmatprep.subr.bf16.mxu1 %v1808_v36  ;;  %v1469_v62 = vld [vmem:[#allocation8] ss:$0 sm:$0xff] }
  0x7a   : > { %1609 = vmatprep.subr.mxu0 %v385_v35 }
  0x7b   : > { %1610 = vmatpush3.msra.mxu0 %v385_v35 }
  0x7c   : > { %1611 = vmatprep.subr.mxu0 %v384_v37  ;;  %1648 = vmatpush3.bf16.msra.mxu1 %v1808_v36 }
  0x7d   : > { %1612 = vmatpush3.msra.mxu0 %v384_v37  ;;  %1649 = vmatprep.subr.bf16.mxu1 %v1809_v54 }
  0x7e   : > { %1613 = vmatprep.subr.mxu0 %v383_v38 }
  0x7f   : > { %1614 = vmatpush3.msra.mxu0 %v383_v38 }
  0x80   : > { %1616 = vmatmul.mubr.f32.vlgmr.msra.gmra.mxu0 %v368_v39  ;;  %1650 = vmatpush3.bf16.msra.mxu1 %v1809_v54 }
  0x81   : > { %1618 = vmatprep.mubr.f32.mxu0 %v369_v40  ;;  %1651 = vmatprep.subr.bf16.mxu1 %v1810_v55 }
  0x82   : > { %1671 = vmatprep.subr.bf16.mxu0 %v1812_v57 }
  0x83   : > { %1672 = vmatpush3.bf16.msra.mxu0 %v1812_v57  ;;  %v1819_v57 = vld [vmem:[#allocation6 + $0x40] sm:$0xff]  }
  0x84   : > { %1619 = vmatmul.mubr.f32.gmra.mxu0 %v370_v41  ;;  %1652 = vmatpush3.bf16.msra.mxu1 %v1810_v55  ;;  %v1817_v55 = vld [vmem:[#allocation6 + $0x50] sm:$0xff]  }
  0x85   : > { %1621 = vmatprep.mubr.f32.mxu0 %v371_v42  ;;  %1653 = vmatprep.subr.bf16.mxu1 %v1811_v56 }
  0x86   : > { %1673 = vmatprep.subr.bf16.mxu0 %v1813_v58 }
  0x87   : > { %1674 = vmatpush3.bf16.msra.mxu0 %v1813_v58  ;;  %v1820_v58 = vld [vmem:[#allocation6 + $0xb8] sm:$0xff]  }
  0x88   : > { %1622 = vmatmul.mubr.f32.gmra.mxu0 %v372_v43  ;;  %1654 = vmatpush3.bf16.msra.mxu1 %v1811_v56  ;;  %v1818_v56 = vld [vmem:[#allocation6 + $0x48] sm:$0xff]  }
  0x89   : > { %1624 = vmatprep.mubr.f32.mxu0 %v373_v44  ;;  %1675 = vmatprep.subr.bf16.mxu0 %v1814_v59 }
  0x8a   : > { %1703 = vmatprep.subr.bf16.mxu1 %v1820_v58 }
  0x8b   : > { %1676 = vmatpush3.bf16.msra.mxu0 %v1814_v59  ;;  %v1821_v59 = vld [vmem:[#allocation6 + $0xb0] sm:$0xff]  }
  0x8c   : > { %1625 = vmatmul.mubr.f32.gmra.mxu0 %v374_v45  ;;  %1677 = vmatprep.subr.bf16.mxu0 %v1815_v60 }
  0x8d   : > { %1627 = vmatprep.mubr.f32.mxu0 %v375_v46 }
  0x8f   : > { %1678 = vmatpush3.bf16.msra.mxu0 %v1815_v60  ;;  %v1822_v60 = vld [vmem:[#allocation6 + $0xa8] sm:$0xff]  }
  0x90   : > { %1628 = vmatmul.mubr.f32.gmra.mxu0 %v376_v47  ;;  %1679 = vmatprep.subr.bf16.mxu0 %v1816_v61 }
  0x91   : > { %1630 = vmatprep.mubr.f32.mxu0 %v377_v48 }
  0x93   : > { %1680 = vmatpush3.bf16.msra.mxu0 %v1816_v61  ;;  %v1823_v61 = vld [vmem:[#allocation6 + $0xa0] sm:$0xff]  }
  0x94   : > { %1631 = vmatmul.mubr.f32.gmra.mxu0 %v378_v49  ;;  %1681 = vmatprep.subr.bf16.mxu0 %v1817_v55 }
  0x95   : > { %1633 = vmatprep.mubr.f32.mxu0 %v379_v50 }
  0x97   : > { %1682 = vmatpush3.bf16.msra.mxu0 %v1817_v55 }
  0x98   : > { %1634 = vmatmul.mubr.f32.gmra.mxu0 %v380_v51  ;;  %1683 = vmatprep.subr.bf16.mxu0 %v1818_v56 }
  0x99   : > { %1636 = vmatprep.mubr.f32.mxu0 %v381_v52 }
  0x9b   : > { %1684 = vmatpush3.bf16.msra.mxu0 %v1818_v56  ;;  %v1825_v56 = vld [vmem:[#allocation6 + $0x90] sm:$0xff]  }
  0x9c   : > { %1637 = vmatmul.mubr.f32.gmra.mxu0 %v382_v53  ;;  %1685 = vmatprep.subr.bf16.mxu0 %v1819_v57 }
  0x9f   : > { %1686 = vmatpush3.bf16.msra.mxu0 %v1819_v57  ;;  %v1826_v57 = vld [vmem:[#allocation6 + $0x88] sm:$0xff]  }
 0x140   : > { %v1617_v63 = vpop.f32.mrf.mxu0 }
 0x141   : > { %v476_v0 = vadd.f32 %v1617_v63, %v1469_v62 }
 0x142   : > { %v470_v1 = vpop.f32.mrf.mxu0 }
 0x143   : > { %v471_v2 = vadd.f32 %v1469_v62, %v470_v1  ;;  %v550_v4 = vmax.f32 %v476_v0, 0.0  ;;  %v1470_v1 = vld [vmem:[#allocation8 + $0x1] ss:$0 sm:$0xff] }
 0x144   : > { %v1620_v3 = vpop.f32.mrf.mxu0 }
 0x145   : > { %v549_v5 = vmax.f32 %v471_v2, 0.0  ;;  %v486_v6 = vadd.f32 %v1620_v3, %v1469_v62 }
 0x146   : > { %v480_v7 = vpop.f32.mrf.mxu0 }
 0x147   : > { %v481_v8 = vadd.f32 %v1469_v62, %v480_v7  ;;  %v565_v9 = vpack.c.bf16 %v550_v4, %v549_v5  ;;  %v552_v11 = vmax.f32 %v486_v6, 0.0 }
 0x148   : > { %v1623_v10 = vpop.f32.mrf.mxu0 }
 0x149   : > { %v551_v12 = vmax.f32 %v481_v8, 0.0  ;;  %v496_v13 = vadd.f32 %v1623_v10, %v1469_v62  ;;  %1655 = vmatprep.mubr.bf16.mxu1 %v565_v9 }
 0x14a   : > { %v490_v14 = vpop.f32.mrf.mxu0 }
 0x14b   : > { %v566_v15 = vpack.c.bf16 %v552_v11, %v551_v12  ;;  %v554_v16 = vmax.f32 %v496_v13, 0.0  ;;  %v491_v17 = vadd.f32 %v1469_v62, %v490_v14 }
 0x14c   : > { %v1626_v18 = vpop.f32.mrf.mxu0 }
 0x14d   : > { %v553_v19 = vmax.f32 %v491_v17, 0.0  ;;  %v506_v20 = vadd.f32 %v1626_v18, %v1469_v62  ;;  %1656 = vmatmul.mubr.bf16.vlgmr.msra.gmra.mxu1 %v566_v15 }
 0x14e   : > { %v500_v21 = vpop.f32.mrf.mxu0  ;;  %1704 = vmatpush3.bf16.msra.mxu1 %v1820_v58  ;;  %v1827_v58 = vld [vmem:[#allocation6 + $0x80] sm:$0xff]  }
 0x14f   : > { %v567_v22 = vpack.c.bf16 %v554_v16, %v553_v19  ;;  %v556_v23 = vmax.f32 %v506_v20, 0.0  ;;  %v501_v24 = vadd.f32 %v1469_v62, %v500_v21  ;;  %1705 = vmatprep.subr.bf16.mxu1 %v1821_v59 }
 0x150   : > { %v1629_v25 = vpop.f32.mrf.mxu0 }
 0x151   : > { %v555_v26 = vmax.f32 %v501_v24, 0.0  ;;  %v516_v27 = vadd.f32 %v1629_v25, %v1469_v62  ;;  %1659 = vmatprep.mubr.bf16.mxu1 %v567_v22 }
 0x152   : > { %v510_v28 = vpop.f32.mrf.mxu0  ;;  %1706 = vmatpush3.bf16.msra.mxu1 %v1821_v59  ;;  %v1171_v59 = vld [vmem:[%s2366_s4 + $0x10] sm:$0xff] }
 0x153   : > { %v568_v29 = vpack.c.bf16 %v556_v23, %v555_v26  ;;  %v558_v30 = vmax.f32 %v516_v27, 0.0  ;;  %v511_v31 = vadd.f32 %v1469_v62, %v510_v28  ;;  %1707 = vmatprep.subr.bf16.mxu1 %v1822_v60 }
 0x154   : > { %v1632_v32 = vpop.f32.mrf.mxu0 }
 0x155   : > { %v557_v33 = vmax.f32 %v511_v31, 0.0  ;;  %v526_v34 = vadd.f32 %v1632_v32, %v1469_v62  ;;  %1660 = vmatmul.mubr.bf16.gmra.mxu1 %v568_v29 }
 0x156   : > { %v520_v35 = vpop.f32.mrf.mxu0  ;;  %1708 = vmatpush3.bf16.msra.mxu1 %v1822_v60  ;;  %v1986_v60 = vmov 0  }
 0x157   : > { %v569_v36 = vpack.c.bf16 %v558_v30, %v557_v33  ;;  %v560_v37 = vmax.f32 %v526_v34, 0.0  ;;  %v521_v38 = vadd.f32 %v1469_v62, %v520_v35  ;;  %1709 = vmatprep.subr.bf16.mxu1 %v1823_v61  ;;  %1803 = vset.pattern.permute.xlu1 %v1986_v60 }
 0x158   : > { %v1635_v39 = vpop.f32.mrf.mxu0  ;;  %1802 = vset.pattern.permute.xlu0 %v1986_v60  ;;  %1197 = vperm.xlu1 %1803, %v1171_v59  }
 0x159   : > { %v559_v40 = vmax.f32 %v521_v38, 0.0  ;;  %v536_v41 = vadd.f32 %v1635_v39, %v1469_v62  ;;  %1663 = vmatprep.mubr.bf16.mxu1 %v569_v36 }
 0x15a   : > { %v530_v42 = vpop.f32.mrf.mxu0  ;;  %1710 = vmatpush3.bf16.msra.mxu1 %v1823_v61  ;;  %v1169_v61 = vld [vmem:[%s2366_s4] sm:$0xff] }
 0x15b   : > { %v570_v43 = vpack.c.bf16 %v560_v37, %v559_v40  ;;  %v562_v44 = vmax.f32 %v536_v41, 0.0  ;;  %v531_v45 = vadd.f32 %v1469_v62, %v530_v42  ;;  %1187 = vperm.xlu0 %1802, %v1169_v61   ;;  %v1170_v61 = vld [vmem:[%s2366_s4 + $0x8] sm:$0xff] }
 0x15c   : > { %v1638_v46 = vpop.f32.mrf.mxu0 }
 0x15d   : > { %v561_v47 = vmax.f32 %v531_v45, 0.0  ;;  %1664 = vmatmul.mubr.bf16.gmra.mxu1 %v570_v43  ;;  %v546_v48 = vadd.f32 %v1638_v46, %v1469_v62 }
 0x15e   : > { %v540_v49 = vpop.f32.mrf.mxu0 }
 0x15f   : > { %v571_v50 = vpack.c.bf16 %v562_v44, %v561_v47  ;;  %v564_v51 = vmax.f32 %v546_v48, 0.0  ;;  %v541_v52 = vadd.f32 %v1469_v62, %v540_v49  ;;  %v1824_v62 = vld [vmem:[#allocation6 + $0x98] sm:$0xff]   ;;  %1192 = vperm.xlu0 %1802, %v1170_v61  }
 0x160   : > { %1711 = vmatprep.subr.bf16.mxu1 %v1824_v62 }
 0x161   : > { %v563_v53 = vmax.f32 %v541_v52, 0.0  ;;  %1667 = vmatprep.mubr.bf16.mxu1 %v571_v50  ;;  %1712 = vmatpush3.bf16.msra.mxu1 %v1824_v62  ;;  %v1172_v62 = vld [vmem:[%s2366_s4 + $0x18] sm:$0xff] }
 0x162   : > { %1713 = vmatprep.subr.bf16.mxu1 %v1825_v56  ;;  %1202 = vperm.xlu1 %1803, %v1172_v62   ;;  %v1173_v62 = vld [vmem:[%s2366_s4 + $0x20] sm:$0xff] }
 0x163   : > { %v572_v54 = vpack.c.bf16 %v564_v51, %v563_v53  ;;  %1207 = vperm.xlu0 %1802, %v1173_v62  }
 0x165   : > { %1668 = vmatmul.mubr.bf16.gmra.mxu1 %v572_v54 }
 0x166   : > { %1714 = vmatpush3.bf16.msra.mxu1 %v1825_v56 }
 0x167   : > { %1715 = vmatprep.subr.bf16.mxu1 %v1826_v57 }
 0x16a   : > { %1716 = vmatpush3.bf16.msra.mxu1 %v1826_v57 }
 0x16b   : > { %1717 = vmatprep.subr.bf16.mxu1 %v1827_v58 }
 0x16e   : > { %1718 = vmatpush3.bf16.msra.mxu1 %v1827_v58 }
 0x20d   : > { %v1657_v63 = vpop.f32.mrf.mxu1 }
 0x20e   : > { %v685_v5 = vadd.f32 %v1657_v63, %v1470_v1  ;;  %v1174_v63 = vld [vmem:[%s2366_s4 + $0x28] sm:$0xff] }
 0x20f   : > { %v676_v0 = vpop.f32.mrf.mxu1  ;;  %1212 = vperm.xlu1 %1803, %v1174_v63   ;;  %v1175_v63 = vld [vmem:[%s2366_s4 + $0x30] sm:$0xff] }
 0x210   : > { %v677_v3 = vadd.f32 %v1470_v1, %v676_v0  ;;  %v741_v12 = vmax.f32 %v685_v5, 0.0  ;;  %v1176_v0 = vld [vmem:[%s2366_s4 + $0x38] sm:$0xff]  ;;  %1217 = vperm.xlu0 %1802, %v1175_v63  }
 0x211   : > { %v1658_v2 = vpop.f32.mrf.mxu1 }
 0x212   : > { %v688_v4 = vadd.f32 %v1658_v2, %v1470_v1  ;;  %v739_v10 = vmax.f32 %v677_v3, 0.0  ;;  %v1180_v2 = vld [vmem:[%s2366_s4 + $0x58] sm:$0xff]  ;;  %v1182_v3 = vld [vmem:[%s2366_s4 + $0x68] sm:$0xff] }
 0x213   : > { %v679_v6 = vpop.f32.mrf.mxu1  ;;  %1222 = vperm.xlu1 %1803, %v1176_v0   ;;  %v1177_v0 = vld [vmem:[%s2366_s4 + $0x40] sm:$0xff] }
 0x214   : > { %v680_v7 = vadd.f32 %v1470_v1, %v679_v6  ;;  %v742_v8 = vmax.f32 %v688_v4, 0.0  ;;  %v1479_v6 = vld [vmem:[#allocation8 + $0x2] ss:$0 sm:$0xff]  ;;  %1227 = vperm.xlu0 %1802, %v1177_v0  }
 0x215   : > { %v1661_v9 = vpop.f32.mrf.mxu1 }
 0x216   : > { %v740_v11 = vmax.f32 %v680_v7, 0.0  ;;  %v701_v13 = vadd.f32 %v1661_v9, %v1470_v1  ;;  %v756_v17 = vpack.c.bf16 %v742_v8, %v741_v12 }
 0x217   : > { %v692_v14 = vpop.f32.mrf.mxu1 }
 0x218   : > { %v755_v15 = vpack.c.bf16 %v740_v11, %v739_v10  ;;  %v693_v16 = vadd.f32 %v1470_v1, %v692_v14  ;;  %v745_v20 = vmax.f32 %v701_v13, 0.0 }
 0x219   : > { %v1662_v18 = vpop.f32.mrf.mxu1 }
 0x21a   : > { %v704_v19 = vadd.f32 %v1662_v18, %v1470_v1  ;;  %1687 = vmatprep.mubr.bf16.mxu0 %v755_v15  ;;  %v743_v22 = vmax.f32 %v693_v16, 0.0 }
 0x21b   : > { %v695_v21 = vpop.f32.mrf.mxu1  ;;  %1688 = vmatmul.mubr.bf16.vlgmr.msra.gmra.mxu0 %v756_v17 }
 0x21c   : > { %v746_v23 = vmax.f32 %v704_v19, 0.0  ;;  %v696_v24 = vadd.f32 %v1470_v1, %v695_v21 }
 0x21d   : > { %v1665_v25 = vpop.f32.mrf.mxu1 }
 0x21e   : > { %v744_v26 = vmax.f32 %v696_v24, 0.0  ;;  %v758_v27 = vpack.c.bf16 %v746_v23, %v745_v20  ;;  %v717_v28 = vadd.f32 %v1665_v25, %v1470_v1 }
 0x21f   : > { %v708_v29 = vpop.f32.mrf.mxu1 }
 0x220   : > { %v757_v30 = vpack.c.bf16 %v744_v26, %v743_v22  ;;  %v709_v31 = vadd.f32 %v1470_v1, %v708_v29  ;;  %v749_v34 = vmax.f32 %v717_v28, 0.0 }
 0x221   : > { %v1666_v32 = vpop.f32.mrf.mxu1 }
 0x222   : > { %v720_v33 = vadd.f32 %v1666_v32, %v1470_v1  ;;  %1691 = vmatprep.mubr.bf16.mxu0 %v757_v30  ;;  %v747_v36 = vmax.f32 %v709_v31, 0.0 }
 0x223   : > { %v711_v35 = vpop.f32.mrf.mxu1  ;;  %1692 = vmatmul.mubr.bf16.gmra.mxu0 %v758_v27 }
 0x224   : > { %v750_v37 = vmax.f32 %v720_v33, 0.0  ;;  %v712_v38 = vadd.f32 %v1470_v1, %v711_v35 }
 0x225   : > { %v1669_v39 = vpop.f32.mrf.mxu1 }
 0x226   : > { %v748_v40 = vmax.f32 %v712_v38, 0.0  ;;  %v760_v41 = vpack.c.bf16 %v750_v37, %v749_v34  ;;  %v733_v42 = vadd.f32 %v1669_v39, %v1470_v1 }
 0x227   : > { %v724_v43 = vpop.f32.mrf.mxu1 }
 0x228   : > { %v759_v44 = vpack.c.bf16 %v748_v40, %v747_v36  ;;  %v725_v45 = vadd.f32 %v1470_v1, %v724_v43  ;;  %v753_v48 = vmax.f32 %v733_v42, 0.0 }
 0x229   : > { %v1670_v46 = vpop.f32.mrf.mxu1 }
 0x22a   : > { %1695 = vmatprep.mubr.bf16.mxu0 %v759_v44  ;;  %v736_v47 = vadd.f32 %v1670_v46, %v1470_v1  ;;  %v751_v50 = vmax.f32 %v725_v45, 0.0 }
 0x22b   : > { %1696 = vmatmul.mubr.bf16.gmra.mxu0 %v760_v41  ;;  %v727_v49 = vpop.f32.mrf.mxu1 }
 0x22c   : > { %v754_v51 = vmax.f32 %v736_v47, 0.0  ;;  %v728_v52 = vadd.f32 %v1470_v1, %v727_v49  ;;  %v1178_v1 = vld [vmem:[%s2366_s4 + $0x48] sm:$0xff] }
 0x22d   : > { %1232 = vperm.xlu1 %1803, %v1178_v1   ;;  %v1179_v1 = vld [vmem:[%s2366_s4 + $0x50] sm:$0xff] }
 0x22e   : > { %v752_v53 = vmax.f32 %v728_v52, 0.0  ;;  %v762_v54 = vpack.c.bf16 %v754_v51, %v753_v48  ;;  %1237 = vperm.xlu0 %1802, %v1179_v1   ;;  %v1188_v1 = vpop.permute.xlu0 %1187 }
 0x230   : > { %v761_v55 = vpack.c.bf16 %v752_v53, %v751_v50 }
 0x231   : > { %1242 = vperm.xlu1 %1803, %v1180_v2   ;;  %v1181_v2 = vld [vmem:[%s2366_s4 + $0x60] sm:$0xff] }
 0x232   : > { %1699 = vmatprep.mubr.bf16.mxu0 %v761_v55  ;;  %1247 = vperm.xlu0 %1802, %v1181_v2  }
 0x233   : > { %1700 = vmatmul.mubr.bf16.gmra.mxu0 %v762_v54 }
 0x235   : > { %1252 = vperm.xlu1 %1803, %v1182_v3   ;;  %v1183_v3 = vld [vmem:[%s2366_s4 + $0x70] sm:$0xff] }
 0x236   : > { %1257 = vperm.xlu0 %1802, %v1183_v3  }
 0x2db   : > { %v1689_v4 = vpop.f32.mrf.mxu0 }
 0x2dc   : > { %v876_v10 = vadd.f32 %v1689_v4, %v1479_v6  ;;  %v1184_v4 = vld [vmem:[%s2366_s4 + $0x78] sm:$0xff] }
 0x2dd   : > { %v867_v5 = vpop.f32.mrf.mxu0  ;;  %1262 = vperm.xlu0 %1802, %v1184_v4   ;;  %v1193_v4 = vpop.permute.xlu0 %1192 }
 0x2de   : > { %v868_v8 = vadd.f32 %v1479_v6, %v867_v5  ;;  %v932_v17 = vmax.f32 %v876_v10, 0.0  ;;  %v1302_v5 = vld [vmem:[#allocation8 + $0x4] sm:$0x1] }
 0x2df   : > { %v1690_v7 = vpop.f32.mrf.mxu0 }
 0x2e0   : > { %v879_v9 = vadd.f32 %v1690_v7, %v1479_v6  ;;  %v930_v15 = vmax.f32 %v868_v8, 0.0  ;;  %v1488_v7 = vld [vmem:[#allocation8 + $0x3] ss:$0 sm:$0xff] }
 0x2e1   : > { %v870_v11 = vpop.f32.mrf.mxu0  ;;  %1305 = vperm.xlu0 %1802, %v1302_v5  }
 0x2e2   : > { %v871_v12 = vadd.f32 %v1479_v6, %v870_v11  ;;  %v933_v13 = vmax.f32 %v879_v9, 0.0 }
 0x2e3   : > { %v1693_v14 = vpop.f32.mrf.mxu0 }
 0x2e4   : > { %v931_v16 = vmax.f32 %v871_v12, 0.0  ;;  %v947_v20 = vpack.c.bf16 %v933_v13, %v932_v17  ;;  %v892_v24 = vadd.f32 %v1693_v14, %v1479_v6 }
 0x2e5   : > { %v883_v18 = vpop.f32.mrf.mxu0 }
 0x2e6   : > { %v946_v19 = vpack.c.bf16 %v931_v16, %v930_v15  ;;  %v884_v22 = vadd.f32 %v1479_v6, %v883_v18  ;;  %v936_v31 = vmax.f32 %v892_v24, 0.0 }
 0x2e7   : > { %v1694_v21 = vpop.f32.mrf.mxu0 }
 0x2e8   : > { %v895_v23 = vadd.f32 %v1694_v21, %v1479_v6  ;;  %1719 = vmatprep.mubr.bf16.mxu1 %v946_v19  ;;  %v934_v29 = vmax.f32 %v884_v22, 0.0 }
 0x2e9   : > { %v886_v25 = vpop.f32.mrf.mxu0  ;;  %1720 = vmatmul.mubr.bf16.vlgmr.msra.gmra.mxu1 %v947_v20 }
 0x2ea   : > { %v887_v26 = vadd.f32 %v1479_v6, %v886_v25  ;;  %v937_v27 = vmax.f32 %v895_v23, 0.0 }
 0x2eb   : > { %v1697_v28 = vpop.f32.mrf.mxu0 }
 0x2ec   : > { %v935_v30 = vmax.f32 %v887_v26, 0.0  ;;  %v908_v32 = vadd.f32 %v1697_v28, %v1479_v6  ;;  %v949_v36 = vpack.c.bf16 %v937_v27, %v936_v31 }
 0x2ed   : > { %v899_v33 = vpop.f32.mrf.mxu0 }
 0x2ee   : > { %v948_v34 = vpack.c.bf16 %v935_v30, %v934_v29  ;;  %v900_v35 = vadd.f32 %v1479_v6, %v899_v33  ;;  %v940_v39 = vmax.f32 %v908_v32, 0.0 }
 0x2ef   : > { %v1698_v37 = vpop.f32.mrf.mxu0 }
 0x2f0   : > { %v911_v38 = vadd.f32 %v1698_v37, %v1479_v6  ;;  %1723 = vmatprep.mubr.bf16.mxu1 %v948_v34  ;;  %v938_v41 = vmax.f32 %v900_v35, 0.0 }
 0x2f1   : > { %v902_v40 = vpop.f32.mrf.mxu0  ;;  %1724 = vmatmul.mubr.bf16.gmra.mxu1 %v949_v36 }
 0x2f2   : > { %v941_v42 = vmax.f32 %v911_v38, 0.0  ;;  %v903_v43 = vadd.f32 %v1479_v6, %v902_v40 }
 0x2f3   : > { %v1701_v44 = vpop.f32.mrf.mxu0 }
 0x2f4   : > { %v939_v45 = vmax.f32 %v903_v43, 0.0  ;;  %v951_v46 = vpack.c.bf16 %v941_v42, %v940_v39  ;;  %v924_v47 = vadd.f32 %v1701_v44, %v1479_v6 }
 0x2f5   : > { %v915_v48 = vpop.f32.mrf.mxu0 }
 0x2f6   : > { %v950_v49 = vpack.c.bf16 %v939_v45, %v938_v41  ;;  %v916_v50 = vadd.f32 %v1479_v6, %v915_v48  ;;  %v944_v53 = vmax.f32 %v924_v47, 0.0 }
 0x2f7   : > { %v1702_v51 = vpop.f32.mrf.mxu0 }
 0x2f8   : > { %1727 = vmatprep.mubr.bf16.mxu1 %v950_v49  ;;  %v927_v52 = vadd.f32 %v1702_v51, %v1479_v6  ;;  %v942_v55 = vmax.f32 %v916_v50, 0.0 }
 0x2f9   : > { %1728 = vmatmul.mubr.bf16.gmra.mxu1 %v951_v46  ;;  %v918_v54 = vpop.f32.mrf.mxu0 }
 0x2fa   : > { %v945_v56 = vmax.f32 %v927_v52, 0.0  ;;  %v919_v57 = vadd.f32 %v1479_v6, %v918_v54 }
 0x2fc   : > { %v943_v58 = vmax.f32 %v919_v57, 0.0  ;;  %v953_v59 = vpack.c.bf16 %v945_v56, %v944_v53 }
 0x2fe   : > { %v952_v60 = vpack.c.bf16 %v943_v58, %v942_v55  ;;  %v1198_v55 = vpop.permute.xlu1 %1197 }
 0x300   : > { %1731 = vmatprep.mubr.bf16.mxu1 %v952_v60 }
 0x301   : > { %1732 = vmatmul.mubr.bf16.gmra.mxu1 %v953_v59 }
 0x302   : > { %v1203_v56 = vpop.permute.xlu1 %1202 }
 0x306   : > { %v1213_v57 = vpop.permute.xlu1 %1212 }
 0x30a   : > { %v1223_v58 = vpop.permute.xlu1 %1222 }
 0x30e   : > { %v1233_v59 = vpop.permute.xlu1 %1232 }
 0x312   : > { %v1243_v60 = vpop.permute.xlu1 %1242 }
 0x316   : > { %v1253_v61 = vpop.permute.xlu1 %1252 }
 0x3a9   : > { %v1721_v6 = vpop.f32.mrf.mxu1 }
 0x3aa   : > { %v1067_v15 = vadd.f32 %v1721_v6, %v1488_v7  ;;  %v1208_v6 = vpop.permute.xlu0 %1207 }
 0x3ab   : > { %v1058_v8 = vpop.f32.mrf.mxu1 }
 0x3ac   : > { %v1059_v9 = vadd.f32 %v1488_v7, %v1058_v8  ;;  %v1123_v18 = vmax.f32 %v1067_v15, 0.0 }
 0x3ad   : > { %v1722_v10 = vpop.f32.mrf.mxu1 }
 0x3ae   : > { %v1121_v11 = vmax.f32 %v1059_v9, 0.0  ;;  %v1070_v19 = vadd.f32 %v1722_v10, %v1488_v7  ;;  %v1218_v9 = vpop.permute.xlu0 %1217 }
 0x3af   : > { %v1061_v12 = vpop.f32.mrf.mxu1 }
 0x3b0   : > { %v1062_v13 = vadd.f32 %v1488_v7, %v1061_v12  ;;  %1137 = vxpose.xlu1.b32.start [1/16] %v1121_v11, 128  ;;  %v1124_v21 = vmax.f32 %v1070_v19, 0.0 }
 0x3b1   : > { %v1725_v14 = vpop.f32.mrf.mxu1 }
 0x3b2   : > { %v1122_v16 = vmax.f32 %v1062_v13, 0.0  ;;  %v1083_v27 = vadd.f32 %v1725_v14, %v1488_v7 }
 0x3b3   : > { %v1074_v17 = vpop.f32.mrf.mxu1 }
 0x3b4   : > { %1138 = vxpose.xlu1.b32.cont [2/16] %v1122_v16, 128  ;;  %v1075_v22 = vadd.f32 %v1488_v7, %v1074_v17  ;;  %v1127_v30 = vmax.f32 %v1083_v27, 0.0  ;;  %v1228_v16 = vpop.permute.xlu0 %1227 }
 0x3b5   : > { %v1726_v20 = vpop.f32.mrf.mxu1 }
 0x3b6   : > { %v1125_v24 = vmax.f32 %v1075_v22, 0.0  ;;  %v1086_v31 = vadd.f32 %v1726_v20, %v1488_v7 }
 0x3b7   : > { %v1077_v23 = vpop.f32.mrf.mxu1 }
 0x3b8   : > { %1139 = vxpose.xlu1.b32.cont [3/16] %v1123_v18, 128  ;;  %v1078_v25 = vadd.f32 %v1488_v7, %v1077_v23  ;;  %v1128_v33 = vmax.f32 %v1086_v31, 0.0 }
 0x3b9   : > { %v1729_v26 = vpop.f32.mrf.mxu1 }
 0x3ba   : > { %v1126_v28 = vmax.f32 %v1078_v25, 0.0  ;;  %v1099_v39 = vadd.f32 %v1729_v26, %v1488_v7  ;;  %v1238_v25 = vpop.permute.xlu0 %1237 }
 0x3bb   : > { %v1090_v29 = vpop.f32.mrf.mxu1 }
 0x3bc   : > { %1140 = vxpose.xlu1.b32.cont [4/16] %v1124_v21, 128  ;;  %v1091_v34 = vadd.f32 %v1488_v7, %v1090_v29  ;;  %v1131_v42 = vmax.f32 %v1099_v39, 0.0 }
 0x3bd   : > { %v1730_v32 = vpop.f32.mrf.mxu1 }
 0x3be   : > { %v1129_v36 = vmax.f32 %v1091_v34, 0.0  ;;  %v1102_v43 = vadd.f32 %v1730_v32, %v1488_v7 }
 0x3bf   : > { %v1093_v35 = vpop.f32.mrf.mxu1 }
 0x3c0   : > { %1141 = vxpose.xlu1.b32.cont [5/16] %v1125_v24, 128  ;;  %v1094_v37 = vadd.f32 %v1488_v7, %v1093_v35  ;;  %v1132_v45 = vmax.f32 %v1102_v43, 0.0 }
 0x3c1   : > { %v1733_v38 = vpop.f32.mrf.mxu1 }
 0x3c2   : > { %v1130_v40 = vmax.f32 %v1094_v37, 0.0  ;;  %v1115_v50 = vadd.f32 %v1733_v38, %v1488_v7 }
 0x3c3   : > { %v1106_v41 = vpop.f32.mrf.mxu1 }
 0x3c4   : > { %1142 = vxpose.xlu1.b32.cont [6/16] %v1126_v28, 128  ;;  %v1107_v46 = vadd.f32 %v1488_v7, %v1106_v41  ;;  %v1135_v52 = vmax.f32 %v1115_v50, 0.0 }
 0x3c5   : > { %v1734_v44 = vpop.f32.mrf.mxu1 }
 0x3c6   : > { %v1133_v48 = vmax.f32 %v1107_v46, 0.0  ;;  %v1118_v53 = vadd.f32 %v1734_v44, %v1488_v7 }
 0x3c7   : > { %v1109_v47 = vpop.f32.mrf.mxu1 }
 0x3c8   : > { %1143 = vxpose.xlu1.b32.cont [7/16] %v1127_v30, 128  ;;  %v1110_v49 = vadd.f32 %v1488_v7, %v1109_v47  ;;  %v1136_v54 = vmax.f32 %v1118_v53, 0.0 }
 0x3ca   : > { %v1134_v51 = vmax.f32 %v1110_v49, 0.0 }
 0x3cc   : > { %1144 = vxpose.xlu1.b32.cont [8/16] %v1128_v33, 128  ;;  %v1248_v33 = vpop.permute.xlu0 %1247 }
 0x3d0   : > { %1145 = vxpose.xlu1.b32.cont [9/16] %v1129_v36, 128 }
 0x3d4   : > { %1146 = vxpose.xlu1.b32.cont [10/16] %v1130_v40, 128 }
 0x3d8   : > { %1147 = vxpose.xlu1.b32.cont [11/16] %v1131_v42, 128  ;;  %v1258_v42 = vpop.permute.xlu0 %1257 }
 0x3dc   : > { %1148 = vxpose.xlu1.b32.cont [12/16] %v1132_v45, 128  ;;  %v1263_v49 = vpop.permute.xlu0 %1262 }
 0x3e0   : > { %1149 = vxpose.xlu1.b32.cont [13/16] %v1133_v48, 128 }
 0x3e4   : > { %1150 = vxpose.xlu1.b32.cont [14/16] %v1134_v51, 128 }
 0x3e8   : > { %1151 = vxpose.xlu1.b32.cont [15/16] %v1135_v52, 128 }
 0x3ec   : > { %1152 = vxpose.xlu1.b32.end [16/16] %v1136_v54, 128 }
 0x42c   : > { %v1153_v62 = vpop.trf.xlu1 }
 0x42d   : > { %v1265_v12 = vmul.f32 %v1188_v1, %v1153_v62  ;;  %v1320_v1 = vstv %s1498_s29 }
 0x430   : > { %v1154_v63 = vpop.trf.xlu1 }
 0x431   : > { %v1266_v10 = vmul.f32 %v1193_v4, %v1154_v63 }
 0x433   : > { %v1281_v14 = vadd.f32 %v1266_v10, %v1265_v12 }
 0x434   : > { %v1155_v0 = vpop.trf.xlu1 }
 0x435   : > { %v1267_v13 = vmul.f32 %v1198_v55, %v1155_v0 }
 0x437   : > { %v1282_v18 = vadd.f32 %v1281_v14, %v1267_v13 }
 0x438   : > { %v1156_v2 = vpop.trf.xlu1 }
 0x439   : > { %v1268_v15 = vmul.f32 %v1203_v56, %v1156_v2 }
 0x43b   : > { %v1283_v20 = vadd.f32 %v1282_v18, %v1268_v15 }
 0x43c   : > { %v1157_v3 = vpop.trf.xlu1 }
 0x43d   : > { %v1269_v19 = vmul.f32 %v1208_v6, %v1157_v3 }
 0x43f   : > { %v1284_v23 = vadd.f32 %v1283_v20, %v1269_v19 }
 0x440   : > { %v1158_v5 = vpop.trf.xlu1 }
 0x441   : > { %v1270_v21 = vmul.f32 %v1213_v57, %v1158_v5 }
 0x443   : > { %v1285_v26 = vadd.f32 %v1284_v23, %v1270_v21 }
 0x444   : > { %v1159_v7 = vpop.trf.xlu1 }
 0x445   : > { %v1271_v24 = vmul.f32 %v1218_v9, %v1159_v7 }
 0x447   : > { %v1286_v29 = vadd.f32 %v1285_v26, %v1271_v24 }
 0x448   : > { %v1160_v8 = vpop.trf.xlu1 }
 0x449   : > { %v1272_v27 = vmul.f32 %v1223_v58, %v1160_v8 }
 0x44b   : > { %v1287_v31 = vadd.f32 %v1286_v29, %v1272_v27 }
 0x44c   : > { %v1161_v11 = vpop.trf.xlu1 }
 0x44d   : > { %v1273_v30 = vmul.f32 %v1228_v16, %v1161_v11 }
 0x44f   : > { %v1288_v35 = vadd.f32 %v1287_v31, %v1273_v30 }
 0x450   : > { %v1162_v17 = vpop.trf.xlu1 }
 0x451   : > { %v1274_v32 = vmul.f32 %v1233_v59, %v1162_v17 }
 0x453   : > { %v1289_v37 = vadd.f32 %v1288_v35, %v1274_v32 }
 0x454   : > { %v1163_v22 = vpop.trf.xlu1 }
 0x455   : > { %v1275_v36 = vmul.f32 %v1238_v25, %v1163_v22 }
 0x457   : > { %v1290_v40 = vadd.f32 %v1289_v37, %v1275_v36 }
 0x458   : > { %v1164_v28 = vpop.trf.xlu1 }
 0x459   : > { %v1276_v38 = vmul.f32 %v1243_v60, %v1164_v28  ;;  %v1306_v60 = vpop.permute.xlu0 %1305 }
 0x45b   : > { %v1291_v43 = vadd.f32 %v1290_v40, %v1276_v38 }
 0x45c   : > { %v1165_v34 = vpop.trf.xlu1 }
 0x45d   : > { %v1277_v41 = vmul.f32 %v1248_v33, %v1165_v34 }
 0x45f   : > { %v1292_v46 = vadd.f32 %v1291_v43, %v1277_v41 }
 0x460   : > { %v1166_v39 = vpop.trf.xlu1 }
 0x461   : > { %v1278_v44 = vmul.f32 %v1253_v61, %v1166_v39  ;;  %v1317_v61 = vlaneseq }
 0x463   : > { %v1293_v48 = vadd.f32 %v1292_v46, %v1278_v44  ;;  %v1318_v0 = vand.u32 127, %v1317_v61 }
 0x464   : > { %v1167_v45 = vpop.trf.xlu1 }
 0x465   : > { %v1279_v47 = vmul.f32 %v1258_v42, %v1167_v45  ;;  %v1321_v4 = vadd.s32 %v1320_v1, %v1318_v0 }
 0x467   : > { %v1294_v51 = vadd.f32 %v1293_v48, %v1279_v47  ;;  %vm1322_vm3 = vcmp.lt.s32.totalorder %v1321_v4, 200 }
 0x468   : > { %v1168_v50 = vpop.trf.xlu1 }
 0x469   : > { %v1280_v52 = vmul.f32 %v1263_v49, %v1168_v50 }
 0x46b   : > { %v1295_v53 = vadd.f32 %v1294_v51, %v1280_v52 }
 0x46d   : > { %v1296_v54 = vrot.slane %v1295_v53, 4 }
 0x46f   : > { %v1297_v55 = vadd.f32 %v1296_v54, %v1295_v53 }
 0x471   : > { %v1298_v56 = vrot.slane %v1297_v55, 2 }
 0x473   : > { %v1299_v57 = vadd.f32 %v1298_v56, %v1297_v55 }
 0x475   : > { %v1300_v58 = vrot.slane %v1299_v57, 1 }
 0x477   : > { %v1301_v59 = vadd.f32 %v1300_v58, %v1299_v57 }
 0x479   : > { %v1308_v62 = vadd.f32 %v1306_v60, %v1301_v59 }
 0x47b   : > { %v1310_v63 = vmul.f32 1.442695, %v1308_v62  ;;  %vm1309_vm2 = vcmp.gt.f32.partialorder %v1308_v62, 0.0 }
 0x47d   : > { %1828 = vpow2.f32 %v1310_v63 }
 0x48a   : > { %v1829_v2 = vpop.eup %1828 }
 0x48b   : > { %v1497_v3 = vadd.f32 -1.0, %v1829_v2 }
 0x48d   : > { %v1313_v5 = vmul.f32 1.6732632, %v1497_v3 }
 0x48f   : > { %v1314_v6 = vsel %vm1309_vm2, %v1308_v62, %v1313_v5 }
 0x490   : > { %v1315_v7 = vmul.f32 1.050701, %v1314_v6 }
 0x492   : > { %v1323_v8 = vsel %vm1322_vm3, %v1315_v7, 0.0  ;;  %1316 = vst [vmem:[%s302_s12] sm:$0x1] %v1315_v7 }
 0x493   : > { %v1325_v9 = vsel %vm1324_vm4, %v1323_v8, 0.0 }
 0x494   : > { %1326 = vadd.xlane.f32.xlu0 %v1325_v9 }
 0x495   : > { %1921 = shalt.err (!%p1918_p6)
}
 0x496   : > { %s1922_s14 = scalar_lea.hbm %s1344_s2, 16  ;;  %s1926_s16 = scalar_lea.hbm %s2367_s5, 32 }
 0x497   : > { %p1923_p11 = scmp.ne.s32.totalorder %s1344_s2, %s1922_s14  ;;  %p1927_p5 = scmp.lt.s32.totalorder %s1344_s2, %s2367_s5 }
 0x498   : > { %p1928_p13 = scmp.lt.s32.totalorder %s1926_s16, %s1922_s14 }
 0x499   : > { %p1924_p0 = pnand %p1923_p11, %p2383_p1 }
 0x49a   : > { %p1929_p10 = por %p1928_p13, %p1927_p5 }
 0x49b   : > { %p1925_p2 = pneg %p1924_p0 }
 0x49d   : > { %p1930_p3 = pnand %p1929_p10, %p1925_p2 }
 0x49f   : > { %1933 = shalt.err (!%p1930_p3)
}
 0x4a0   : > { %1744 = dma.vmem_to_hbm [thread:$0]  (%p2383_p1), %s1347_s7, 16, %s1344_s2, %s1331_s13   ;;  %vm1328_vm5 = vcmask 0  }
 0x4a1   : > { %p313_p7 = scmp.lt.s32.totalorder %s2044_s25, 1 }
 0x4a3   : > { %s2392_s25 = smov (!%p313_p7, %s2044_s25), 1 }
 0x4a4   : > { %s315_s28 = scalar_lea.vmem %s2368_s6, %s2392_s25 }
 0x51d   : > { %v1327_v10 = vpop.xlane.xlu0 %1326 }
 0x51e   : > { %1329 = vst.msk [vmem:[%s315_s28] sm:$0x1] %vm1328_vm5, %v1327_v10 }
 0x51f PF: > { %s1361_s17 = sand.u32 1, %s1964_s21   ;;  %p2384_p9 = scmp.ne.s32.totalorder %s2376_s10, 0 }
 0x520   : > { %s1362_s9 = scalar_lea.sflag [#allocation5], %s1361_s17 }
 0x521   : > { %p1754_p12 = pnand %p1457_p8, %p2384_p9 }
 0x523   : > { %p1755_p4 = pneg %p1754_p12 }
 0x525   : > { %1959 = dma.done.wait (%p1755_p4), %s1362_s9, 16  }
 0x526   : > { %1961 = vsyncadd (%p1755_p4), %s1362_s9, 4294967280  ;;  %p21_p1 = scmp.ge.s32.totalorder %s2048_s27, 4   ;;  %s2385_s21 = smov %s1968_s22 }
 0x527   : > { %s2386_s22 = smov %s1972_s23  ;;  %s2387_s23 = smov %s2060_s30 }
 0x528   : > { %s2388_s24 = smov %s2048_s27  ;;  %23 = sbr.rel (!%p21_p1) target bundleno = 8 (0x8), region = 107 }
 0x52d   :  { %1372 = vsyncpa [#allocation4], 1 }
 0x52e   :  { %1374 = vsyncpa [#allocation4 + $0x1], 1 }
 0x52f   :  { %1375 = vsyncpa [#allocation7], 1 }
 0x530   :  { %1376 = vsyncpa [#allocation5], 1 }
 0x531   :  { %1378 = vsyncpa [#allocation5 + $0x1], 1 }

</bundles_post_ra>
